<compile_context>
chip_gen: v6e
topology: v6e:2x2x1
jax: 0.10.0
libtpu: 0.0.40
codegen_flags: <defaults>
</compile_context>

<pallas_src>
import functools

import jax
import jax.numpy as jnp
from jax import lax
from jax.experimental import pallas as pl
from jax.experimental.pallas import tpu as pltpu

_LANE = 128
_SUBLANE = 8


def _round_up(x, m):
    return ((x + m - 1) // m) * m


def _vmem_capacity_bytes():
    """Per-TensorCore VMEM capacity; conservative 64 MiB (v7x) if query fails."""
    try:
        cap = int(pltpu.get_tpu_info().vmem_capacity_bytes)
        if cap > 0:
            return cap
    except Exception:
        pass
    return 64 * 1024 * 1024


def _choose_seq_tile(seq_len, target):
    """Largest divisor of seq_len that is a multiple of 8 and <= target."""
    if seq_len % _SUBLANE == 0:
        t = min(seq_len, max(int(target), _SUBLANE))
        t -= t % _SUBLANE
        while t >= _SUBLANE:
            if seq_len % t == 0:
                return t
            t -= _SUBLANE
    return seq_len


def _embed_tile_kernel(ids_ref, emb_ref, pos_ref, out_ref, *,
                       vocab_size, use_onehot, drop_prob, training, seed):
    # ids_ref : VMEM (tile_s, 1) int32 token ids for this (seq_tile, batch) step
    # emb_ref : VMEM (V, D)   embedding table (single-buffered, resident)
    # pos_ref : VMEM (tile_s, D) positional rows for this seq tile
    # out_ref : VMEM (tile_s, D) output slab (batch dim squeezed)
    tile_s = out_ref.shape[0]
    ids_col = ids_ref[...]                                   # (tile_s, 1) int32

    if use_onehot:
        # Gather as one-hot matmul on the (otherwise idle) MXU: exact (one
        # nonzero per row, f32 accumulate) and keeps the vld/vst path free.
        # Ids outside [0, V) yield an all-zero row (no OOB read possible).
        iota_v = lax.broadcasted_iota(jnp.int32, (tile_s, vocab_size), 1)
        onehot = (iota_v == ids_col).astype(emb_ref.dtype)   # (tile_s, V)
        tok = jnp.dot(onehot, emb_ref[...],
                      preferred_element_type=jnp.float32)    # (tile_s, D) f32
    else:
        # Slab-wide row gather for larger VMEM-resident vocabularies.  Clamp
        # ids: TPU has no runtime OOB check, id >= V would silently read junk.
        ids_vec = jnp.clip(ids_col[:, 0], 0, vocab_size - 1)
        tok = jnp.take(emb_ref[...], ids_vec, axis=0).astype(jnp.float32)

    # One slab-wide upcast/add (no per-row casts); single full-block store.
    result = tok + pos_ref[...].astype(jnp.float32)

    if training and drop_prob > 0.0:
        # Inverted dropout (train-mode nn.Dropout). Statically compiled out
        # when training=False, so the eval path carries no PRNG cost.
        s = pl.program_id(0)
        b = pl.program_id(1)
        pltpu.prng_seed(seed + s * pl.num_programs(1) + b)
        bits = pltpu.prng_random_bits(result.shape)
        u = bits if bits.dtype == jnp.uint32 else pltpu.bitcast(bits, jnp.uint32)
        thresh = jnp.uint32(min(int(drop_prob * 4294967296.0), 4294967295))
        keep = u >= thresh
        result = jnp.where(keep, result * (1.0 / (1.0 - drop_prob)), 0.0)

    out_ref[...] = result.astype(out_ref.dtype)


def total_embedding_forward(ids, emb_table, pos_table, drop_prob=0.0, *,
                            training=False, rng_seed=0, onehot_max_vocab=2048):
    """ids: (B, S) int; emb_table: (V, D); pos_table: (max_len, D)."""
    B, S = ids.shape
    V, D = emb_table.shape
    max_len, D_pos = pos_table.shape
    assert D_pos == D, "pos_table feature dim must match embedding dim"
    assert S <= max_len, f"sequence length {S} exceeds max_len {max_len}"

    emb_itemsize = jnp.dtype(emb_table.dtype).itemsize
    pos_itemsize = jnp.dtype(pos_table.dtype).itemsize
    out_dtype = emb_table.dtype
    out_itemsize = jnp.dtype(out_dtype).itemsize

    use_onehot = V <= onehot_max_vocab

    # ---- generation-aware VMEM budget ------------------------------------
    vmem_cap = _vmem_capacity_bytes()            # 128 MiB v5e/v6e, 64 MiB v7x
    budget = int(vmem_cap * 0.9)                 # leave compiler headroom
    headroom = 2 * 1024 * 1024

    Vp_sub = _round_up(V, _SUBLANE)
    Dp = _round_up(D, _LANE)
    emb_resident = Vp_sub * Dp * emb_itemsize    # single-buffered (Buffered(1))

    # Per-output-row cost of the pipelined tiles (double-buffered pos/out/ids
    # blocks, plus the one-hot scratch slab on the matmul path).
    per_row = (2 * Dp * (pos_itemsize + out_itemsize)   # pos + out tiles
               + 2 * _LANE * 4)                         # (tile_s, 1) ids tile
    if use_onehot:
        per_row += _round_up(V, _LANE) * emb_itemsize   # one-hot scratch

    fixed = emb_resident + headroom
    if fixed + _SUBLANE * per_row > budget:
        # TODO(synk): manual-DMA gather path (memory_space=pl.ANY on the table
        # + pltpu.make_async_copy row fetches with a small staging buffer) for
        # tables that cannot be VMEM-resident (e.g. 32K x 1024 bf16 on v7x).
        raise ValueError(
            f"embedding table ({emb_resident / 2**20:.1f} MiB) does not fit "
            f"the per-core VMEM budget ({budget / 2**20:.1f} MiB of "
            f"{vmem_cap / 2**20:.0f} MiB)")

    # Bigger seq tiles on 128 MiB-VMEM parts; 256 on 64 MiB-VMEM parts (v7x).
    target_rows = 1024 if vmem_cap >= 96 * 1024 * 1024 else 256
    max_rows_by_vmem = (budget - fixed) // per_row
    target_rows = max(_SUBLANE, min(target_rows, int(max_rows_by_vmem)))
    tile_s = _choose_seq_tile(S, target_rows)
    n_s_tiles = S // tile_s

    needed = fixed + _round_up(tile_s, _SUBLANE) * per_row
    if needed > budget:
        raise ValueError(
            f"VMEM footprint {needed / 2**20:.1f} MiB exceeds budget "
            f"{budget / 2**20:.1f} MiB (table {emb_resident / 2**20:.1f} MiB, "
            f"seq tile {tile_s})")
    vmem_limit = int(min(max(needed, 16 * 1024 * 1024), budget))

    # ---- build the call ----------------------------------------------------
    ids_col = ids.reshape(B * S, 1).astype(jnp.int32)
    pos_used = pos_table[:S, :]

    kernel = functools.partial(
        _embed_tile_kernel, vocab_size=V, use_onehot=use_onehot,
        drop_prob=float(drop_prob), training=bool(training),
        seed=int(rng_seed))

    def _run(single_buffer_table):
        emb_spec_kwargs = {}
        if single_buffer_table:
            emb_spec_kwargs["pipeline_mode"] = pl.Buffered(1)
        return pl.pallas_call(
            kernel,
            out_shape=jax.ShapeDtypeStruct((B, S, D), out_dtype),
            # seq tile outer, batch inner: the pos-tile block index is constant
            # across the inner axis, so its DMA is skipped B-1 of every B steps.
            grid=(n_s_tiles, B),
            in_specs=[
                # per-tile token ids, pipelined like any other input
                pl.BlockSpec((tile_s, 1), lambda s, b: (b * n_s_tiles + s, 0)),
                # full embedding table, constant block index -> VMEM-resident
                pl.BlockSpec((V, D), lambda s, b: (0, 0), **emb_spec_kwargs),
                # positional rows for this sequence tile (contiguous slab)
                pl.BlockSpec((tile_s, D), lambda s, b: (s, 0)),
            ],
            # batch dim squeezed; one full (tile_s, D) slab store per step
            out_specs=pl.BlockSpec((None, tile_s, D), lambda s, b: (b, s, 0)),
            compiler_params=pltpu.CompilerParams(
                dimension_semantics=("parallel", "parallel"),
                vmem_limit_bytes=vmem_limit,
            ),
        )(ids_col, emb_table, pos_used)

    try:
        return _run(single_buffer_table=True)
    except Exception:
        # Defensive fallback if Buffered(1) is rejected by this jax build;
        # identical kernel, default (double-buffered) table spec.
        return _run(single_buffer_table=False)


def init_params(key, vocab_size, d_model, max_len, dtype=jnp.float32):
    # token_embedding: nn.Embedding(vocab_size, d_model, padding_idx=1)
    w = jax.random.normal(key, (vocab_size, d_model), dtype=jnp.float32)
    w = w.at[1].set(0.0)  # padding_idx=1 row is zero (forward semantics)

    # position_embedding: fixed sinusoidal table (max_len, d_model)
    pos = jnp.arange(max_len, dtype=jnp.float32)[:, None]
    two_i = jnp.arange(0, d_model, 2, dtype=jnp.float32)
    angle = pos / (10000.0 ** (two_i / d_model))
    enc = jnp.zeros((max_len, d_model), dtype=jnp.float32)
    enc = enc.at[:, 0::2].set(jnp.sin(angle))
    enc = enc.at[:, 1::2].set(jnp.cos(angle[:, : d_model // 2]))  # odd-D safe
    return w.astype(dtype), enc.astype(dtype)


if __name__ == "__main__":
    vocab_size, d_model, max_len = 64, 32, 16
    B, S = 2, 8

    key = jax.random.PRNGKey(0)
    k_w, k_ids = jax.random.split(key)

    emb_table, pos_table = init_params(k_w, vocab_size, d_model, max_len)
    ids = jax.random.randint(k_ids, (B, S), 0, vocab_size, dtype=jnp.int32)

    # eval-mode forward (nn.Dropout is identity at inference)
    out = total_embedding_forward(ids, emb_table, pos_table, drop_prob=0.1)
    out = jax.block_until_ready(out)

    # pure-JAX reference check
    ref = emb_table[ids] + pos_table[:S, :][None, :, :]
    assert out.shape == (B, S, d_model)
    assert jnp.allclose(out, ref, atol=1e-6), "mismatch vs reference"

    print("KERNEL_OK")
</pallas_src>

<mosaic_0001>
module attributes {stable_mosaic.version = 11 : i64} {
  func.func @_embed_tile_kernel(%arg0: i32, %arg1: i32, %arg2: memref<8x1xi32, #tpu.memory_space<vmem>>, %arg3: memref<64x32xf32, #tpu.memory_space<vmem>>, %arg4: memref<8x32xf32, #tpu.memory_space<vmem>>, %arg5: memref<1x8x32xf32, #tpu.memory_space<vmem>>) attributes {dimension_semantics = [#tpu.dimension_semantics<parallel>, #tpu.dimension_semantics<parallel>], iteration_bounds = array<i64: 1, 2>, scalar_prefetch = 0 : i64, scratch_operands = 0 : i64, tpu.core_type = #tpu.core_type<tc>, window_params = [{transform_indices = @transform_0, window_bounds = array<i64: 8, 1>}, {pipeline_mode = #tpu.pipeline_mode<synchronous>, transform_indices = @transform_1, window_bounds = array<i64: 64, 32>}, {transform_indices = @transform_2, window_bounds = array<i64: 8, 32>}, {transform_indices = @transform_3, window_bounds = array<i64: 1, 8, 32>}]} {
    %c0 = arith.constant 0 : index
    %c0_0 = arith.constant 0 : index
    %0 = vector.load %arg2[%c0, %c0_0] : memref<8x1xi32, #tpu.memory_space<vmem>>, vector<8x1xi32>
    %1 = tpu.iota {dimensions = array<i32: 1>} : vector<8x64xi32>
    %2 = vector.broadcast %0 : vector<8x1xi32> to vector<8x64xi32>
    %3 = arith.cmpi eq, %1, %2 : vector<8x64xi32>
    %4 = arith.extui %3 : vector<8x64xi1> to vector<8x64xi32>
    %5 = arith.sitofp %4 : vector<8x64xi32> to vector<8x64xf32>
    %c0_1 = arith.constant 0 : index
    %c0_2 = arith.constant 0 : index
    %6 = vector.load %arg3[%c0_1, %c0_2] : memref<64x32xf32, #tpu.memory_space<vmem>>, vector<64x32xf32>
    %cst = arith.constant dense<0.000000e+00> : vector<8x32xf32>
    %7 = tpu.matmul %5, %6, %cst {dimension_numbers = #tpu.dot_dimension_numbers<[1], [0], [0], [1], [0, 0, 1, 1], [], []>} : vector<8x64xf32>, vector<64x32xf32>, vector<8x32xf32> -> vector<8x32xf32>
    %c0_3 = arith.constant 0 : index
    %c0_4 = arith.constant 0 : index
    %8 = vector.load %arg4[%c0_3, %c0_4] : memref<8x32xf32, #tpu.memory_space<vmem>>, vector<8x32xf32>
    %9 = arith.addf %7, %8 : vector<8x32xf32>
    %c0_5 = arith.constant 0 : index
    %c0_6 = arith.constant 0 : index
    %c0_7 = arith.constant 0 : index
    %10 = vector.load %arg5[%c0_5, %c0_6, %c0_7] : memref<1x8x32xf32, #tpu.memory_space<vmem>>, vector<1x8x32xf32>
    %11 = vector.shape_cast %10 : vector<1x8x32xf32> to vector<8x32xf32>
    %12 = vector.shape_cast %9 : vector<8x32xf32> to vector<1x8x32xf32>
    tpu.vector_store %arg5[%c0_5, %c0_6, %c0_7], %12 {strides = array<i32>} : memref<1x8x32xf32, #tpu.memory_space<vmem>>, vector<1x8x32xf32>,
    return
  }
  func.func @transform_0(%arg0: i32, %arg1: i32) -> (i32, i32) {
    %c1_i32 = arith.constant 1 : i32
    %0 = arith.muli %arg1, %c1_i32 : i32
    %1 = arith.addi %0, %arg0 : i32
    %c0_i32 = arith.constant 0 : i32
    %c0_i32_0 = arith.constant 0 : i32
    return %1, %c0_i32 : i32, i32
  }
  func.func @transform_1(%arg0: i32, %arg1: i32) -> (i32, i32) {
    %c0_i32 = arith.constant 0 : i32
    %c0_i32_0 = arith.constant 0 : i32
    %c0_i32_1 = arith.constant 0 : i32
    return %c0_i32, %c0_i32_0 : i32, i32
  }
  func.func @transform_2(%arg0: i32, %arg1: i32) -> (i32, i32) {
    %c0_i32 = arith.constant 0 : i32
    %c0_i32_0 = arith.constant 0 : i32
    return %arg0, %c0_i32 : i32, i32
  }
  func.func @transform_3(%arg0: i32, %arg1: i32) -> (i32, i32, i32) {
    %c0_i32 = arith.constant 0 : i32
    %c0_i32_0 = arith.constant 0 : i32
    return %arg1, %arg0, %c0_i32 : i32, i32, i32
  }
}

module attributes {stable_mosaic.version = 11 : i64} {
  func.func @_embed_tile_kernel(%arg0: i32, %arg1: i32, %arg2: memref<8x1xi32, #tpu.memory_space<vmem>>, %arg3: memref<64x32xf32, #tpu.memory_space<vmem>>, %arg4: memref<8x32xf32, #tpu.memory_space<vmem>>, %arg5: memref<1x8x32xf32, #tpu.memory_space<vmem>>) attributes {dimension_semantics = [#tpu.dimension_semantics<parallel>, #tpu.dimension_semantics<parallel>], iteration_bounds = array<i64: 1, 2>, scalar_prefetch = 0 : i64, scratch_operands = 0 : i64, tpu.core_type = #tpu.core_type<tc>, window_params = [{transform_indices = @transform_0, window_bounds = array<i64: 8, 1>}, {pipeline_mode = #tpu.pipeline_mode<synchronous>, transform_indices = @transform_1, window_bounds = array<i64: 64, 32>}, {transform_indices = @transform_2, window_bounds = array<i64: 8, 32>}, {transform_indices = @transform_3, window_bounds = array<i64: 1, 8, 32>}]} {
    %c0 = arith.constant 0 : index
    %c0_0 = arith.constant 0 : index
    %0 = vector.load %arg2[%c0, %c0_0] : memref<8x1xi32, #tpu.memory_space<vmem>>, vector<8x1xi32>
    %1 = tpu.iota {dimensions = array<i32: 1>} : vector<8x64xi32>
    %2 = vector.broadcast %0 : vector<8x1xi32> to vector<8x64xi32>
    %3 = arith.cmpi eq, %1, %2 : vector<8x64xi32>
    %4 = arith.extui %3 : vector<8x64xi1> to vector<8x64xi32>
    %5 = arith.sitofp %4 : vector<8x64xi32> to vector<8x64xf32>
    %c0_1 = arith.constant 0 : index
    %c0_2 = arith.constant 0 : index
    %6 = vector.load %arg3[%c0_1, %c0_2] : memref<64x32xf32, #tpu.memory_space<vmem>>, vector<64x32xf32>
    %cst = arith.constant dense<0.000000e+00> : vector<8x32xf32>
    %7 = tpu.matmul %5, %6, %cst {dimension_numbers = #tpu.dot_dimension_numbers<[1], [0], [0], [1], [0, 0, 1, 1], [], []>} : vector<8x64xf32>, vector<64x32xf32>, vector<8x32xf32> -> vector<8x32xf32>
    %c0_3 = arith.constant 0 : index
    %c0_4 = arith.constant 0 : index
    %8 = vector.load %arg4[%c0_3, %c0_4] : memref<8x32xf32, #tpu.memory_space<vmem>>, vector<8x32xf32>
    %9 = arith.addf %7, %8 : vector<8x32xf32>
    %c0_5 = arith.constant 0 : index
    %c0_6 = arith.constant 0 : index
    %c0_7 = arith.constant 0 : index
    %10 = vector.load %arg5[%c0_5, %c0_6, %c0_7] : memref<1x8x32xf32, #tpu.memory_space<vmem>>, vector<1x8x32xf32>
    %11 = vector.shape_cast %10 : vector<1x8x32xf32> to vector<8x32xf32>
    %12 = vector.shape_cast %9 : vector<8x32xf32> to vector<1x8x32xf32>
    tpu.vector_store %arg5[%c0_5, %c0_6, %c0_7], %12 {strides = array<i32>} : memref<1x8x32xf32, #tpu.memory_space<vmem>>, vector<1x8x32xf32>,
    return
  }
  func.func @transform_0(%arg0: i32, %arg1: i32) -> (i32, i32) {
    %c1_i32 = arith.constant 1 : i32
    %0 = arith.muli %arg1, %c1_i32 : i32
    %1 = arith.addi %0, %arg0 : i32
    %c0_i32 = arith.constant 0 : i32
    %c0_i32_0 = arith.constant 0 : i32
    return %1, %c0_i32 : i32, i32
  }
  func.func @transform_1(%arg0: i32, %arg1: i32) -> (i32, i32) {
    %c0_i32 = arith.constant 0 : i32
    %c0_i32_0 = arith.constant 0 : i32
    %c0_i32_1 = arith.constant 0 : i32
    return %c0_i32, %c0_i32_0 : i32, i32
  }
  func.func @transform_2(%arg0: i32, %arg1: i32) -> (i32, i32) {
    %c0_i32 = arith.constant 0 : i32
    %c0_i32_0 = arith.constant 0 : i32
    return %arg0, %c0_i32 : i32, i32
  }
  func.func @transform_3(%arg0: i32, %arg1: i32) -> (i32, i32, i32) {
    %c0_i32 = arith.constant 0 : i32
    %c0_i32_0 = arith.constant 0 : i32
    return %arg1, %arg0, %c0_i32 : i32, i32, i32
  }
}

</mosaic_0001>

<bundles_post_ra>
// kernel: tpu_custom_call.1
= control target key start
LH: loop header
LB: loop body
LE: loop exit
PB: predicated region body
PF: predicated region fallthrough
CT: control target
= control target key end

     0   :  { %8 = vsyncpa [#allocation3], 0  ;;  %s731_s0 = inlined_call_operand.vmem [shape: s32[16,1], index: 0, kind: input, shape index: {}]   ;;  %s732_s1 = inlined_call_operand.vmem [shape: f32[64,32], index: 1, kind: input, shape index: {}]   ;;  %s733_s2 = inlined_call_operand.vmem [shape: f32[8,32], index: 2, kind: input, shape index: {}]   ;;  %s734_s3 = inlined_call_operand.hbm [shape: f32[2,8,32], index: 3, kind: output, shape index: {}]  }
   0x1   :  { %10 = vsyncpa [#allocation3 + $0x1], 0  ;;  %s599_s12 = smov 0   ;;  %s601_s13 = smov 0  }
   0x2   :  { %s603_s14 = smov 0   ;;  %s605_s15 = smov 0  }
   0x3   :  { %s607_s16 = smov 0   ;;  %s609_s17 = smov 0  }
   0x4 LB: > { %s396_s18 = sadd.s32 4294967295, %s573_s17   ;;  %s397_s19 = sadd.s32 4294967294, %s573_s17   ;;  %s573_s17 = sphi %s609_s17, %s16_s17   ;;  %s569_s16 = sphi %s607_s16, %s741_s16   ;;  %s565_s15 = sphi %s605_s15, %s740_s15   ;;  %s561_s14 = sphi %s603_s14, %s739_s14   ;;  %s557_s13 = sphi %s601_s13, %s738_s13   ;;  %s553_s12 = sphi %s599_s12, %s737_s12  }
   0x5   : > { %s25_s20 = sadd.s32 1, %s569_s16  ;;  %s112_s21 = sadd.s32 1, %s561_s14 }
   0x6   : > { %p26_p0 = scmp.ge.s32.totalorder %s25_s20, 2  ;;  %p122_p1 = scmp.ne.s32.totalorder %s561_s14, %s557_s13 }
   0x7   : > { %p123_p2 = scmp.eq.s32.totalorder %s396_s18, 1  ;;  %p128_p3 = scmp.ne.s32.totalorder %s557_s13, %s553_s12 }
   0x8   : > { %s743_s20 = smov (%p26_p0, %s25_s20), 0  ;;  %p129_p5 = scmp.eq.s32.totalorder %s397_s19, 1 }
   0x9   : > { %p639_p4 = por %p123_p2, %p122_p1  ;;  %s107_s23 = ssub.s32 %s569_s16, %s743_s20 }
   0xa   : > { %p401_p6 = scmp.ge.s32.totalorder %s573_s17, 1  ;;  %p110_p7 = scmp.eq.s32.totalorder %s107_s23, 0 }
   0xb   : > { %p646_p8 = por %p129_p5, %p128_p3  ;;  %p166_p9 = scmp.lt.s32.totalorder %s573_s17, 3 }
   0xc   : > { %s652_s25 = scalar_select %p110_p7, %s561_s14, %s112_s21  }
   0xd   : > { %p167_p10 = pnand %p401_p6, %p166_p9 }
   0xe   : > { %p195_p11 = scmp.lt.s32.totalorder (!%p167_p10), %s565_s15, 1  ;;  %s407_s7 = sshll.u32 (!%p167_p10), %s565_s15, 7 }
   0xf   : > { %170 = sbr.rel (%p167_p10) target bundleno = 359 (0x167), region = 32  ;;  %s691_s18 = scalar_lea.hbm (!%p167_p10), %s734_s3, %s407_s7 }
  0x14   : > { %v220_v0 = vld [vmem:[%s732_s1 + $0x38] sm:$0xff]  ;;  %v575_v1 = vmov 0   ;;  %v576_v2 = vmov 0.0   ;;  %v219_v3 = vld [vmem:[%s732_s1 + $0x30] sm:$0xff]  ;;  %s196_s30 = scalar_select %p195_p11, %s565_s15, 1  ;;  %v218_v4 = vld [vmem:[%s732_s1 + $0x28] sm:$0xff]  ;;  %v205_v11 = vlaneseq }
  0x15   : > { %496 = vset.pattern.permute.xlu0 %v575_v1  ;;  %419 = vmatprep.subr.mxu0 %v576_v2  ;;  %vm577_vm0 = vmmov 0   ;;  %v217_v5 = vld [vmem:[%s732_s1 + $0x20] sm:$0xff]  ;;  %v216_v7 = vld [vmem:[%s732_s1 + $0x18] sm:$0xff]  ;;  %v215_v8 = vld [vmem:[%s732_s1 + $0x10] sm:$0xff]  ;;  %vm222_vm1 = vcmask 523264   ;;  %vm296_vm3 = vcmask 261120  }
  0x16   : > { %420 = vmatpush3.msra.mxu0 %v220_v0  ;;  %s403_s6 = sshll.u32 %s196_s30, 3  ;;  %435 = vmatprep.mubr.msk.f32.mxu0 %vm577_vm0, %v576_v2  ;;  %v214_v9 = vld [vmem:[%s732_s1 + $0x8] sm:$0xff]  ;;  %v213_v10 = vld [vmem:[%s732_s1] sm:$0xff]  ;;  %v206_v12 = vand.u32 127, %v205_v11  ;;  %s191_s30 = sand.u32 1, %s557_s13  }
  0x17   : > { %421 = vmatprep.subr.mxu0 %v576_v2  ;;  %s198_s9 = scalar_lea.vmem %s731_s0, %s403_s6  ;;  %s402_s4 = sshll.u32 %s191_s30, 3  ;;  %v221_v15 = vld [vmem:[%s733_s2] sm:$0xff] }
  0x18   : > { %422 = vmatpush3.msra.mxu0 %v219_v3  ;;  %v204_v6 = vld [vmem:[%s198_s9] sm:$0xff]  ;;  %s193_s8 = scalar_lea.vmem [#allocation2], %s402_s4  ;;  %s299_s19 = scalar_lea.sflag [#allocation3], %s191_s30 }
  0x19   : > { %423 = vmatprep.subr.mxu0 %v576_v2  ;;  %208 = vperm.xlu0 %496, %v204_v6   ;;  %s313_s9 = sshll.u32 %s193_s8, 4  ;;  %s578_s15 = smov [#allocation2]   ;;  %s314_s9 = int_to_ptr.vmem [resolvable:$true] %s313_s9 }
  0x1a   : > { %424 = vmatpush3.msra.mxu0 %v218_v4  ;;  %s497_s21 = scalar_lea.vmem %s314_s9, 128  ;;  %s501_s23 = sshll.u32 %s578_s15, 4  ;;  %s502_s23 = int_to_ptr.vmem [resolvable:$false] %s501_s23 }
  0x1b   : > { %425 = vmatprep.subr.mxu0 %v576_v2  ;;  %p498_p12 = scmp.ne.s32.totalorder %s314_s9, %s497_s21  ;;  %s503_s26 = scalar_lea.vmem %s502_s23, 256 }
  0x1c   : > { %426 = vmatpush3.msra.mxu0 %v217_v5  ;;  %p504_p1 = scmp.lt.s32.totalorder %s314_s9, %s502_s23  ;;  %p505_p2 = scmp.lt.s32.totalorder %s503_s26, %s497_s21 }
  0x1d   : > { %427 = vmatprep.subr.mxu0 %v576_v2  ;;  %p499_p13 = pnand %p498_p12, %p639_p4 }
  0x1e   : > { %428 = vmatpush3.msra.mxu0 %v216_v7  ;;  %p506_p3 = por %p505_p2, %p504_p1 }
  0x1f   : > { %429 = vmatprep.subr.mxu0 %v576_v2  ;;  %p500_p0 = pneg %p499_p13 }
  0x20   : > { %430 = vmatpush3.msra.mxu0 %v215_v8 }
  0x21   : > { %431 = vmatprep.subr.mxu0 %v576_v2  ;;  %p507_p5 = pnand %p506_p3, %p500_p0 }
  0x22   : > { %432 = vmatpush3.msra.mxu0 %v214_v9 }
  0x23   : > { %433 = vmatprep.subr.mxu0 %v576_v2 }
  0x24   : > { %434 = vmatpush3.msra.mxu0 %v213_v10 }
  0x94   : > { %v209_v13 = vpop.permute.xlu0 %208 }
  0x95   : > { %vm210_vm2 = vcmp.eq.s32.totalorder %v206_v12, %v209_v13 }
  0x96   : > { %v404_v14 = vsel %vm210_vm2, 1.0, %v576_v2 }
  0x97   : > { %436 = vmatmul.mubr.msk.f32.vlgmr.msra.gmra.mxu0 %vm222_vm1, %v404_v14 }
 0x157   : > { %v292_v16 = vpop.f32.mrf.mxu0 }
 0x158   : > { %v293_v17 = vadd.f32 %v292_v16, %v221_v15 }
 0x159   : > { %v437_v18 = vpop.f32.mrf.mxu0 }
 0x15a   : > { %297 = vst.msk [vmem:[%s193_s8] sm:$0xff] %vm296_vm3, %v293_v17 }
 0x15b   : > { %510 = shalt.err (!%p507_p5)
}
 0x15c   : > { %s511_s27 = scalar_lea.hbm %s691_s18, 128  ;;  %s515_s30 = scalar_lea.hbm %s734_s3, 256 }
 0x15d   : > { %p512_p6 = scmp.ne.s32.totalorder %s691_s18, %s511_s27  ;;  %p516_p10 = scmp.lt.s32.totalorder %s691_s18, %s734_s3 }
 0x15e   : > { %p517_p11 = scmp.lt.s32.totalorder %s515_s30, %s511_s27 }
 0x15f   : > { %p513_p7 = pnand %p512_p6, %p639_p4 }
 0x160   : > { %p518_p12 = por %p517_p11, %p516_p10 }
 0x161   : > { %p514_p9 = pneg %p513_p7 }
 0x163   : > { %p519_p13 = pnand %p518_p12, %p514_p9 }
 0x165   : > { %522 = shalt.err (!%p519_p13)
}
 0x166   : > { %438 = dma.vmem_to_hbm [thread:$0]  (%p639_p4), %s314_s9, 128, %s691_s18, %s299_s19  }
 0x167 PF: > { %p444_p0 = scmp.ge.s32.totalorder %s573_s17, 2  ;;  %s325_s6 = sand.u32 1, %s553_s12  }
 0x168   : > { %s326_s7 = scalar_lea.sflag [#allocation3], %s325_s6 }
 0x169   : > { %p441_p1 = pnand %p444_p0, %p646_p8 }
 0x16b   : > { %p442_p2 = pneg %p441_p1 }
 0x16d   : > { %548 = dma.done.wait (%p442_p2), %s326_s7, 128  }
 0x16e   : > { %550 = vsyncadd (%p442_p2), %s326_s7, 4294967168  ;;  %s16_s17 = sadd.s32 1, %s573_s17   ;;  %s737_s12 = smov %s557_s13 }
 0x16f   : > { %p13_p3 = scmp.ge.s32.totalorder %s16_s17, 4   ;;  %s738_s13 = smov %s561_s14 }
 0x170   : > { %s739_s14 = smov %s652_s25  ;;  %s740_s15 = smov %s569_s16 }
 0x171   : > { %s741_s16 = smov %s743_s20  ;;  %15 = sbr.rel (!%p13_p3) target bundleno = 4 (0x4), region = 70 }
 0x176   :  { %331 = vsyncpa [#allocation3], 1 }
 0x177   :  { %333 = vsyncpa [#allocation3 + $0x1], 1 }

// kernel: tpu_custom_call.1
= control target key start
LH: loop header
LB: loop body
LE: loop exit
PB: predicated region body
PF: predicated region fallthrough
CT: control target
= control target key end

     0   :  { %8 = vsyncpa [#allocation3], 0  ;;  %s731_s0 = inlined_call_operand.vmem [shape: s32[16,1], index: 0, kind: input, shape index: {}]   ;;  %s732_s1 = inlined_call_operand.vmem [shape: f32[64,32], index: 1, kind: input, shape index: {}]   ;;  %s733_s2 = inlined_call_operand.vmem [shape: f32[8,32], index: 2, kind: input, shape index: {}]   ;;  %s734_s3 = inlined_call_operand.hbm [shape: f32[2,8,32], index: 3, kind: output, shape index: {}]  }
   0x1   :  { %10 = vsyncpa [#allocation3 + $0x1], 0  ;;  %s599_s12 = smov 0   ;;  %s601_s13 = smov 0  }
   0x2   :  { %s603_s14 = smov 0   ;;  %s605_s15 = smov 0  }
   0x3   :  { %s607_s16 = smov 0   ;;  %s609_s17 = smov 0  }
   0x4 LB: > { %s396_s18 = sadd.s32 4294967295, %s573_s17   ;;  %s397_s19 = sadd.s32 4294967294, %s573_s17   ;;  %s573_s17 = sphi %s609_s17, %s16_s17   ;;  %s569_s16 = sphi %s607_s16, %s741_s16   ;;  %s565_s15 = sphi %s605_s15, %s740_s15   ;;  %s561_s14 = sphi %s603_s14, %s739_s14   ;;  %s557_s13 = sphi %s601_s13, %s738_s13   ;;  %s553_s12 = sphi %s599_s12, %s737_s12  }
   0x5   : > { %s25_s20 = sadd.s32 1, %s569_s16  ;;  %s112_s21 = sadd.s32 1, %s561_s14 }
   0x6   : > { %p26_p0 = scmp.ge.s32.totalorder %s25_s20, 2  ;;  %p122_p1 = scmp.ne.s32.totalorder %s561_s14, %s557_s13 }
   0x7   : > { %p123_p2 = scmp.eq.s32.totalorder %s396_s18, 1  ;;  %p128_p3 = scmp.ne.s32.totalorder %s557_s13, %s553_s12 }
   0x8   : > { %s743_s20 = smov (%p26_p0, %s25_s20), 0  ;;  %p129_p5 = scmp.eq.s32.totalorder %s397_s19, 1 }
   0x9   : > { %p639_p4 = por %p123_p2, %p122_p1  ;;  %s107_s23 = ssub.s32 %s569_s16, %s743_s20 }
   0xa   : > { %p401_p6 = scmp.ge.s32.totalorder %s573_s17, 1  ;;  %p110_p7 = scmp.eq.s32.totalorder %s107_s23, 0 }
   0xb   : > { %p646_p8 = por %p129_p5, %p128_p3  ;;  %p166_p9 = scmp.lt.s32.totalorder %s573_s17, 3 }
   0xc   : > { %s652_s25 = scalar_select %p110_p7, %s561_s14, %s112_s21  }
   0xd   : > { %p167_p10 = pnand %p401_p6, %p166_p9 }
   0xe   : > { %p195_p11 = scmp.lt.s32.totalorder (!%p167_p10), %s565_s15, 1  ;;  %s407_s7 = sshll.u32 (!%p167_p10), %s565_s15, 7 }
   0xf   : > { %170 = sbr.rel (%p167_p10) target bundleno = 359 (0x167), region = 32  ;;  %s691_s18 = scalar_lea.hbm (!%p167_p10), %s734_s3, %s407_s7 }
  0x14   : > { %v220_v0 = vld [vmem:[%s732_s1 + $0x38] sm:$0xff]  ;;  %v575_v1 = vmov 0   ;;  %v576_v2 = vmov 0.0   ;;  %v219_v3 = vld [vmem:[%s732_s1 + $0x30] sm:$0xff]  ;;  %s196_s30 = scalar_select %p195_p11, %s565_s15, 1  ;;  %v218_v4 = vld [vmem:[%s732_s1 + $0x28] sm:$0xff]  ;;  %v205_v11 = vlaneseq }
  0x15   : > { %496 = vset.pattern.permute.xlu0 %v575_v1  ;;  %419 = vmatprep.subr.mxu0 %v576_v2  ;;  %vm577_vm0 = vmmov 0   ;;  %v217_v5 = vld [vmem:[%s732_s1 + $0x20] sm:$0xff]  ;;  %v216_v7 = vld [vmem:[%s732_s1 + $0x18] sm:$0xff]  ;;  %v215_v8 = vld [vmem:[%s732_s1 + $0x10] sm:$0xff]  ;;  %vm222_vm1 = vcmask 523264   ;;  %vm296_vm3 = vcmask 261120  }
  0x16   : > { %420 = vmatpush3.msra.mxu0 %v220_v0  ;;  %s403_s6 = sshll.u32 %s196_s30, 3  ;;  %435 = vmatprep.mubr.msk.f32.mxu0 %vm577_vm0, %v576_v2  ;;  %v214_v9 = vld [vmem:[%s732_s1 + $0x8] sm:$0xff]  ;;  %v213_v10 = vld [vmem:[%s732_s1] sm:$0xff]  ;;  %v206_v12 = vand.u32 127, %v205_v11  ;;  %s191_s30 = sand.u32 1, %s557_s13  }
  0x17   : > { %421 = vmatprep.subr.mxu0 %v576_v2  ;;  %s198_s9 = scalar_lea.vmem %s731_s0, %s403_s6  ;;  %s402_s4 = sshll.u32 %s191_s30, 3  ;;  %v221_v15 = vld [vmem:[%s733_s2] sm:$0xff] }
  0x18   : > { %422 = vmatpush3.msra.mxu0 %v219_v3  ;;  %v204_v6 = vld [vmem:[%s198_s9] sm:$0xff]  ;;  %s193_s8 = scalar_lea.vmem [#allocation2], %s402_s4  ;;  %s299_s19 = scalar_lea.sflag [#allocation3], %s191_s30 }
  0x19   : > { %423 = vmatprep.subr.mxu0 %v576_v2  ;;  %208 = vperm.xlu0 %496, %v204_v6   ;;  %s313_s9 = sshll.u32 %s193_s8, 4  ;;  %s578_s15 = smov [#allocation2]   ;;  %s314_s9 = int_to_ptr.vmem [resolvable:$true] %s313_s9 }
  0x1a   : > { %424 = vmatpush3.msra.mxu0 %v218_v4  ;;  %s497_s21 = scalar_lea.vmem %s314_s9, 128  ;;  %s501_s23 = sshll.u32 %s578_s15, 4  ;;  %s502_s23 = int_to_ptr.vmem [resolvable:$false] %s501_s23 }
  0x1b   : > { %425 = vmatprep.subr.mxu0 %v576_v2  ;;  %p498_p12 = scmp.ne.s32.totalorder %s314_s9, %s497_s21  ;;  %s503_s26 = scalar_lea.vmem %s502_s23, 256 }
  0x1c   : > { %426 = vmatpush3.msra.mxu0 %v217_v5  ;;  %p504_p1 = scmp.lt.s32.totalorder %s314_s9, %s502_s23  ;;  %p505_p2 = scmp.lt.s32.totalorder %s503_s26, %s497_s21 }
  0x1d   : > { %427 = vmatprep.subr.mxu0 %v576_v2  ;;  %p499_p13 = pnand %p498_p12, %p639_p4 }
  0x1e   : > { %428 = vmatpush3.msra.mxu0 %v216_v7  ;;  %p506_p3 = por %p505_p2, %p504_p1 }
  0x1f   : > { %429 = vmatprep.subr.mxu0 %v576_v2  ;;  %p500_p0 = pneg %p499_p13 }
  0x20   : > { %430 = vmatpush3.msra.mxu0 %v215_v8 }
  0x21   : > { %431 = vmatprep.subr.mxu0 %v576_v2  ;;  %p507_p5 = pnand %p506_p3, %p500_p0 }
  0x22   : > { %432 = vmatpush3.msra.mxu0 %v214_v9 }
  0x23   : > { %433 = vmatprep.subr.mxu0 %v576_v2 }
  0x24   : > { %434 = vmatpush3.msra.mxu0 %v213_v10 }
  0x94   : > { %v209_v13 = vpop.permute.xlu0 %208 }
  0x95   : > { %vm210_vm2 = vcmp.eq.s32.totalorder %v206_v12, %v209_v13 }
  0x96   : > { %v404_v14 = vsel %vm210_vm2, 1.0, %v576_v2 }
  0x97   : > { %436 = vmatmul.mubr.msk.f32.vlgmr.msra.gmra.mxu0 %vm222_vm1, %v404_v14 }
 0x157   : > { %v292_v16 = vpop.f32.mrf.mxu0 }
 0x158   : > { %v293_v17 = vadd.f32 %v292_v16, %v221_v15 }
 0x159   : > { %v437_v18 = vpop.f32.mrf.mxu0 }
 0x15a   : > { %297 = vst.msk [vmem:[%s193_s8] sm:$0xff] %vm296_vm3, %v293_v17 }
 0x15b   : > { %510 = shalt.err (!%p507_p5)
}
 0x15c   : > { %s511_s27 = scalar_lea.hbm %s691_s18, 128  ;;  %s515_s30 = scalar_lea.hbm %s734_s3, 256 }
 0x15d   : > { %p512_p6 = scmp.ne.s32.totalorder %s691_s18, %s511_s27  ;;  %p516_p10 = scmp.lt.s32.totalorder %s691_s18, %s734_s3 }
 0x15e   : > { %p517_p11 = scmp.lt.s32.totalorder %s515_s30, %s511_s27 }
 0x15f   : > { %p513_p7 = pnand %p512_p6, %p639_p4 }
 0x160   : > { %p518_p12 = por %p517_p11, %p516_p10 }
 0x161   : > { %p514_p9 = pneg %p513_p7 }
 0x163   : > { %p519_p13 = pnand %p518_p12, %p514_p9 }
 0x165   : > { %522 = shalt.err (!%p519_p13)
}
 0x166   : > { %438 = dma.vmem_to_hbm [thread:$0]  (%p639_p4), %s314_s9, 128, %s691_s18, %s299_s19  }
 0x167 PF: > { %p444_p0 = scmp.ge.s32.totalorder %s573_s17, 2  ;;  %s325_s6 = sand.u32 1, %s553_s12  }
 0x168   : > { %s326_s7 = scalar_lea.sflag [#allocation3], %s325_s6 }
 0x169   : > { %p441_p1 = pnand %p444_p0, %p646_p8 }
 0x16b   : > { %p442_p2 = pneg %p441_p1 }
 0x16d   : > { %548 = dma.done.wait (%p442_p2), %s326_s7, 128  }
 0x16e   : > { %550 = vsyncadd (%p442_p2), %s326_s7, 4294967168  ;;  %s16_s17 = sadd.s32 1, %s573_s17   ;;  %s737_s12 = smov %s557_s13 }
 0x16f   : > { %p13_p3 = scmp.ge.s32.totalorder %s16_s17, 4   ;;  %s738_s13 = smov %s561_s14 }
 0x170   : > { %s739_s14 = smov %s652_s25  ;;  %s740_s15 = smov %s569_s16 }
 0x171   : > { %s741_s16 = smov %s743_s20  ;;  %15 = sbr.rel (!%p13_p3) target bundleno = 4 (0x4), region = 70 }
 0x176   :  { %331 = vsyncpa [#allocation3], 1 }
 0x177   :  { %333 = vsyncpa [#allocation3 + $0x1], 1 }

</bundles_post_ra>
